<compile_context>
chip_gen: v6e
topology: v6e:2x2x1
jax: 0.10.0
libtpu: 0.0.40
codegen_flags: <defaults>
</compile_context>

<pallas_src>
import math
import functools

import jax
import jax.numpy as jnp
from jax.experimental import pallas as pl
from jax.experimental.pallas import tpu as pltpu

LANE = 128
SUBLANE = 8


def _metric_kernel(x_ref, w_ref, aw_ref, vec_ref, o_ref, *, seq_len, cp):
    """One grid step processes one block of batch rows.

    x_ref  : (Bblk, T*Cin)  f32  raw input rows (time*channel flattened, lane-dense)
    w_ref  : (T*Cin, T*Cp)  bf16 banded causal-conv weight (BN1 + BN2 scales folded)
    aw_ref : (T*Cp, T)      f32  block-diagonal attention-weight selector
    vec_ref: (3, T*Cp)      f32  row0 = pre-ReLU bias, row1 = post-ReLU bias
                                 (BN2 shift + gaussian positional bias),
                                 row2[:T] = attention bias
    o_ref  : (Bblk, Cp)     f32  attention-pooled output (channels padded to Cp)
    """
    T = seq_len
    xb = x_ref[...].astype(jnp.bfloat16)                               # (Bblk, T*Cin)

    # Causal dilated conv + conv bias + BN1 + BN2-scale as ONE matmul against the
    # precomputed banded weight (no per-tap slices, rolls or lane concats).
    conv = jnp.dot(xb, w_ref[...], preferred_element_type=jnp.float32)  # (Bblk, T*Cp)
    h = jnp.maximum(conv + vec_ref[0:1, :], 0.0) + vec_ref[1:2, :]      # (Bblk, T*Cp)

    # Per-timestep attention logits via a block-diagonal selector matmul; the
    # per-timestep bias is added after the reduce (cheap (Bblk, T) add).
    logits = jnp.dot(h, aw_ref[...], preferred_element_type=jnp.float32)  # (Bblk, T)
    score = jnp.tanh(logits + vec_ref[2:3, :T])                           # (Bblk, T)

    # Weighted pooling over time: each strip h[:, t*Cp:(t+1)*Cp] is a whole
    # 128-lane tile group (free static view), multiplied by the per-row scalar
    # score[:, t] and accumulated into a (Bblk, Cp) lane-dense output.
    acc = score[:, 0:1] * h[:, 0:cp]
    for t in range(1, T):
        acc = acc + score[:, t:t + 1] * h[:, t * cp:(t + 1) * cp]
    o_ref[...] = acc


def _block_and_vmem(batch, seq_len, cin, cp):
    """Pick the per-step batch block and an explicit scoped-VMEM limit.

    Footprints are counted in the lane-dense layout: per batch row the dominant
    term is the (T*Cp) f32 activation slab (+ one temporary), plus double-buffered
    x / output tiles; the banded weight and selector are fixed per-call costs.
    """
    try:
        phys = int(pltpu.get_tpu_info().vmem_capacity_bytes)  # 128 MiB v5e/v6e, 64 MiB v7x
    except Exception:
        phys = 64 * 1024 * 1024                               # conservative (v7x)
    vmem_limit = min(int(phys * 0.55), 96 * 1024 * 1024)

    t_cin = seq_len * cin
    t_cp = seq_len * cp
    # Fixed (batch independent) operands, double buffered.
    fixed = 2 * (t_cin * t_cp * 2) + 2 * (t_cp * seq_len * 4) + 2 * (8 * t_cp * 4)
    # Per batch-row bytes: activation slab x2 (value + temp), x (f32 dbl-buf + bf16
    # cast), output block (dbl-buf) + small score vectors.
    per_row = 2 * t_cp * 4 + 2 * t_cin * 4 + t_cin * 2 + 4 * cp * 4 + 8 * seq_len
    budget = max(vmem_limit // 2 - fixed, 1 << 20)
    max_bb = max(SUBLANE, (budget // per_row) // SUBLANE * SUBLANE)

    if batch <= max_bb:
        # Whole batch in one grid step (fewer ~600-cycle step overheads), unless the
        # batch is large enough that a 2-way split can feed both v7x TensorCores.
        half = pl.cdiv(batch, 2)
        half8 = pl.cdiv(half, SUBLANE) * SUBLANE
        if half * seq_len >= 4096 and half8 < batch and half8 <= max_bb:
            return half8, vmem_limit
        return batch, vmem_limit
    return max_bb, vmem_limit


def metric_model_forward(x, w_big, aw_sel, vecs, *, out_dim, block_b=None):
    """x: (B, T, Cin) float input; returns (B, out_dim) attention-pooled features."""
    B, T, Cin = x.shape
    t_cin, t_cp = w_big.shape
    assert t_cin == T * Cin and t_cp % T == 0
    cp = t_cp // T
    assert out_dim <= cp

    # Lane-dense view of the input (merge of the two minor dims) — no HBM copy.
    x2 = x.astype(jnp.float32).reshape(B, T * Cin)

    auto_bb, vmem_limit = _block_and_vmem(B, T, Cin, cp)
    if block_b is None:
        block_b = auto_bb
    n_blocks = pl.cdiv(B, block_b)   # ragged last block: OOB reads are per-row
                                     # garbage, OOB output rows are dropped.

    kernel = functools.partial(_metric_kernel, seq_len=T, cp=cp)
    out = pl.pallas_call(
        kernel,
        out_shape=jax.ShapeDtypeStruct((B, cp), jnp.float32),
        grid_spec=pltpu.PrefetchScalarGridSpec(
            num_scalar_prefetch=0,
            grid=(n_blocks,),
            in_specs=[
                pl.BlockSpec((block_b, T * Cin), lambda i: (i, 0)),  # x rows
                pl.BlockSpec((t_cin, t_cp), lambda i: (0, 0)),       # banded conv weight
                pl.BlockSpec((t_cp, T), lambda i: (0, 0)),           # attention selector
                pl.BlockSpec((3, t_cp), lambda i: (0, 0)),           # packed bias vectors
            ],
            out_specs=pl.BlockSpec((block_b, cp), lambda i: (i, 0)),
        ),
        compiler_params=pltpu.CompilerParams(
            dimension_semantics=("parallel",),
            vmem_limit_bytes=vmem_limit,
        ),
    )(x2, w_big, aw_sel, vecs)

    # Channels were zero-padded to a 128-lane multiple for dense stores; trim.
    # Matches torch .squeeze() for B > 1 (B == 1 would additionally drop the batch dim).
    return out[:, :out_dim]


def init_params(key, metric_num, hidden, kernel_size, seq_len, sigma=5.0, eps=1e-5):
    kw, kb, ka = jax.random.split(key, 3)

    # Conv1d init (kaiming-uniform-style bound); layout (K, Cin, Cout).
    fan_in = metric_num * kernel_size
    bound = 1.0 / math.sqrt(fan_in)
    conv_w = jax.random.uniform(kw, (kernel_size, metric_num, hidden),
                                jnp.float32, -bound, bound)
    conv_b = jax.random.uniform(kb, (1, hidden), jnp.float32, -bound, bound)

    # BatchNorm1d eval-mode defaults (gamma=1, beta=0, mean=0, var=1).
    bn_scale = jnp.full((1, hidden), 1.0 / math.sqrt(1.0 + eps), jnp.float32)
    bn_shift = jnp.zeros((1, hidden), jnp.float32)

    # Gaussian positional bias: N(mu = T//2, sigma) pdf at each timestep.
    mu = float(seq_len // 2)
    pos = jnp.arange(seq_len, dtype=jnp.float32)[:, None]
    gauss = (1.0 / (math.sqrt(2.0 * math.pi) * sigma)) * jnp.exp(
        -0.5 * ((pos - mu) / sigma) ** 2)                              # (T, 1)

    # Attention weight: glorot-uniform with stdv = sqrt(6/(hidden + 1)); bias = 0.
    stdv = math.sqrt(6.0 / (hidden + 1))
    atten_w = jax.random.uniform(ka, (seq_len, hidden), jnp.float32, -stdv, stdv)
    atten_b = jnp.zeros((seq_len, 1), jnp.float32)

    return dict(conv_w=conv_w, conv_b=conv_b,
                bn1_scale=bn_scale, bn1_shift=bn_shift,
                bn2_scale=bn_scale, bn2_shift=bn_shift,
                gauss=gauss, atten_w=atten_w, atten_bias=atten_b)


def fold_params(params, kernel_size, dilation):
    """Host-side constant folding (run once):
      * BN1 and BN2 eval-mode affines folded into the conv weight / biases (folding
        the BN2 scale through the ReLU is valid because the folded scale is > 0),
      * the K-tap causal dilated conv turned into one banded (T*Cin, T*Cp) matrix,
      * the per-timestep attention weight turned into a block-diagonal selector so
        the channel reduce becomes a matmul instead of a reshape + lane reduction,
      * output channels zero-padded to Cp (128-lane multiple) for dense stores.
    """
    K, Cin, Cout = params["conv_w"].shape
    assert K == kernel_size
    T = params["gauss"].shape[0]
    P = (K - 1) * dilation
    cp = pl.cdiv(Cout, LANE) * LANE

    s1, h1 = params["bn1_scale"][0], params["bn1_shift"][0]
    s2, h2 = params["bn2_scale"][0], params["bn2_shift"][0]
    w_fold = params["conv_w"] * (s1 * s2)                      # (K, Cin, Cout)
    bias_pre_c = (params["conv_b"][0] * s1 + h1) * s2          # (Cout,)

    # Banded causal-conv matrix: column block t_out receives tap k from input time
    # t_in = t_out + k*dilation - P (zero if out of range -> causal left padding).
    w_big = jnp.zeros((T * Cin, T * cp), jnp.float32)
    for k in range(K):
        off = k * dilation - P
        for t_out in range(T):
            t_in = t_out + off
            if 0 <= t_in < T:
                w_big = w_big.at[t_in * Cin:(t_in + 1) * Cin,
                                 t_out * cp:t_out * cp + Cout].add(w_fold[k])
    w_big = w_big.astype(jnp.bfloat16)                         # bf16 MXU operand

    # Block-diagonal attention-weight selector (zero rows for the padded channels).
    aw_sel = jnp.zeros((T * cp, T), jnp.float32)
    for t in range(T):
        aw_sel = aw_sel.at[t * cp:t * cp + Cout, t].set(params["atten_w"][t])

    gauss = params["gauss"][:, 0]                              # (T,)
    bias_pre = jnp.zeros((T, cp), jnp.float32).at[:, :Cout].set(
        jnp.broadcast_to(bias_pre_c, (T, Cout)))
    bias_post = jnp.zeros((T, cp), jnp.float32).at[:, :Cout].set(
        h2[None, :] + gauss[:, None])
    atten_b = jnp.zeros((T * cp,), jnp.float32).at[:T].set(params["atten_bias"][:, 0])
    vecs = jnp.stack([bias_pre.reshape(-1), bias_post.reshape(-1), atten_b], axis=0)
    return w_big, aw_sel, vecs, cp


def _reference_forward(x, params, *, kernel_size, dilation):
    """Pure-JAX f32 reference mirroring the PyTorch module (eval-mode BN)."""
    B, T, Cin = x.shape
    Cout = params["conv_w"].shape[-1]
    P = (kernel_size - 1) * dilation
    xp = jnp.pad(x.astype(jnp.float32), ((0, 0), (P, 0), (0, 0)))
    y = jnp.zeros((B, T, Cout), jnp.float32)
    for k in range(kernel_size):
        y = y + jnp.einsum("btc,cd->btd",
                           xp[:, k * dilation:k * dilation + T, :],
                           params["conv_w"][k])
    y = y + params["conv_b"][None]
    y = jnp.maximum(y * params["bn1_scale"][None] + params["bn1_shift"][None], 0.0)
    h = y * params["bn2_scale"][None] + params["bn2_shift"][None] + params["gauss"][None]
    score = jnp.tanh(jnp.sum(h * params["atten_w"][None], axis=-1, keepdims=True)
                     + params["atten_bias"][None])
    return jnp.sum(score * h, axis=1)


if __name__ == "__main__":
    # Small, module-consistent shapes:
    #   batch=2, seq(chunk_lenth)=8, metric_num=4, metric_hiddens=[32],
    #   metric_kernel_sizes=[2] -> single conv layer, dilation = 2**0 = 1.
    B, T, METRIC_NUM, HIDDEN, K = 2, 8, 4, 32, 2
    DILATION = 1

    key = jax.random.PRNGKey(0)
    kx, kp = jax.random.split(key)
    x = jax.random.normal(kx, (B, T, METRIC_NUM), dtype=jnp.float32)

    params = init_params(kp, METRIC_NUM, HIDDEN, K, T)
    w_big, aw_sel, vecs, cp = fold_params(params, K, DILATION)

    fwd = jax.jit(functools.partial(metric_model_forward, out_dim=HIDDEN))
    out = jax.block_until_ready(fwd(x, w_big, aw_sel, vecs))

    assert out.shape == (B, HIDDEN), out.shape
    assert bool(jnp.all(jnp.isfinite(out)))

    ref = _reference_forward(x, params, kernel_size=K, dilation=DILATION)
    # Conv matmul uses bf16 MXU operands (f32 accumulation) -> bf16-level tolerance.
    assert bool(jnp.allclose(out, ref, rtol=2e-2, atol=2e-2)), "mismatch vs reference"

    print("KERNEL_OK")
</pallas_src>

<mosaic_0001>
module attributes {stable_mosaic.version = 11 : i64} {
  func.func @_metric_kernel(%arg0: i32, %arg1: memref<2x32xf32, #tpu.memory_space<vmem>>, %arg2: memref<32x1024xbf16, #tpu.memory_space<vmem>>, %arg3: memref<1024x8xf32, #tpu.memory_space<vmem>>, %arg4: memref<3x1024xf32, #tpu.memory_space<vmem>>, %arg5: memref<2x128xf32, #tpu.memory_space<vmem>>) attributes {dimension_semantics = [#tpu.dimension_semantics<parallel>], iteration_bounds = array<i64: 1>, scalar_prefetch = 0 : i64, scratch_operands = 0 : i64, tpu.core_type = #tpu.core_type<tc>, window_params = [{transform_indices = @transform_0, window_bounds = array<i64: 2, 32>}, {pipeline_mode = #tpu.pipeline_mode<synchronous>, transform_indices = @transform_1, window_bounds = array<i64: 32, 1024>}, {pipeline_mode = #tpu.pipeline_mode<synchronous>, transform_indices = @transform_2, window_bounds = array<i64: 1024, 8>}, {pipeline_mode = #tpu.pipeline_mode<synchronous>, transform_indices = @transform_3, window_bounds = array<i64: 3, 1024>}, {transform_indices = @transform_4, window_bounds = array<i64: 2, 128>}]} {
    %c0 = arith.constant 0 : index
    %c0_0 = arith.constant 0 : index
    %0 = vector.load %arg1[%c0, %c0_0] : memref<2x32xf32, #tpu.memory_space<vmem>>, vector<2x32xf32>
    %1 = arith.truncf %0 : vector<2x32xf32> to vector<2x32xbf16>
    %c0_1 = arith.constant 0 : index
    %c0_2 = arith.constant 0 : index
    %2 = vector.load %arg2[%c0_1, %c0_2] : memref<32x1024xbf16, #tpu.memory_space<vmem>>, vector<32x1024xbf16>
    %cst = arith.constant dense<0.000000e+00> : vector<2x1024xf32>
    %3 = tpu.matmul %1, %2, %cst {dimension_numbers = #tpu.dot_dimension_numbers<[1], [0], [0], [1], [0, 0, 1, 1], [], []>} : vector<2x32xbf16>, vector<32x1024xbf16>, vector<2x1024xf32> -> vector<2x1024xf32>
    %c0_3 = arith.constant 0 : index
    %c0_4 = arith.constant 0 : index
    %4 = vector.load %arg4[%c0_3, %c0_4] : memref<3x1024xf32, #tpu.memory_space<vmem>>, vector<1x1024xf32>
    %5 = vector.broadcast %4 : vector<1x1024xf32> to vector<2x1024xf32>
    %6 = arith.addf %3, %5 : vector<2x1024xf32>
    %cst_5 = arith.constant 0.000000e+00 : f32
    %7 = vector.broadcast %cst_5 : f32 to vector<2x1024xf32>
    %8 = arith.maximumf %6, %7 : vector<2x1024xf32>
    %c1 = arith.constant 1 : index
    %c0_6 = arith.constant 0 : index
    %9 = vector.load %arg4[%c1, %c0_6] : memref<3x1024xf32, #tpu.memory_space<vmem>>, vector<1x1024xf32>
    %10 = vector.broadcast %9 : vector<1x1024xf32> to vector<2x1024xf32>
    %11 = arith.addf %8, %10 : vector<2x1024xf32>
    %c0_7 = arith.constant 0 : index
    %c0_8 = arith.constant 0 : index
    %12 = vector.load %arg3[%c0_7, %c0_8] : memref<1024x8xf32, #tpu.memory_space<vmem>>, vector<1024x8xf32>
    %cst_9 = arith.constant dense<0.000000e+00> : vector<2x8xf32>
    %13 = tpu.matmul %11, %12, %cst_9 {dimension_numbers = #tpu.dot_dimension_numbers<[1], [0], [0], [1], [0, 0, 1, 1], [], []>} : vector<2x1024xf32>, vector<1024x8xf32>, vector<2x8xf32> -> vector<2x8xf32>
    %c2 = arith.constant 2 : index
    %c0_10 = arith.constant 0 : index
    %14 = vector.load %arg4[%c2, %c0_10] : memref<3x1024xf32, #tpu.memory_space<vmem>>, vector<1x8xf32>
    %15 = vector.broadcast %14 : vector<1x8xf32> to vector<2x8xf32>
    %16 = arith.addf %13, %15 : vector<2x8xf32>
    %17 = math.tanh %16 : vector<2x8xf32>
    %18 = vector.extract_strided_slice %17 {offsets = [0, 0], sizes = [2, 1], strides = [1, 1]} : vector<2x8xf32> to vector<2x1xf32>
    %19 = vector.extract_strided_slice %11 {offsets = [0, 0], sizes = [2, 128], strides = [1, 1]} : vector<2x1024xf32> to vector<2x128xf32>
    %20 = vector.broadcast %18 : vector<2x1xf32> to vector<2x128xf32>
    %21 = arith.mulf %20, %19 : vector<2x128xf32>
    %22 = vector.extract_strided_slice %17 {offsets = [0, 1], sizes = [2, 1], strides = [1, 1]} : vector<2x8xf32> to vector<2x1xf32>
    %23 = vector.extract_strided_slice %11 {offsets = [0, 128], sizes = [2, 128], strides = [1, 1]} : vector<2x1024xf32> to vector<2x128xf32>
    %24 = vector.broadcast %22 : vector<2x1xf32> to vector<2x128xf32>
    %25 = arith.mulf %24, %23 : vector<2x128xf32>
    %26 = arith.addf %21, %25 : vector<2x128xf32>
    %27 = vector.extract_strided_slice %17 {offsets = [0, 2], sizes = [2, 1], strides = [1, 1]} : vector<2x8xf32> to vector<2x1xf32>
    %28 = vector.extract_strided_slice %11 {offsets = [0, 256], sizes = [2, 128], strides = [1, 1]} : vector<2x1024xf32> to vector<2x128xf32>
    %29 = vector.broadcast %27 : vector<2x1xf32> to vector<2x128xf32>
    %30 = arith.mulf %29, %28 : vector<2x128xf32>
    %31 = arith.addf %26, %30 : vector<2x128xf32>
    %32 = vector.extract_strided_slice %17 {offsets = [0, 3], sizes = [2, 1], strides = [1, 1]} : vector<2x8xf32> to vector<2x1xf32>
    %33 = vector.extract_strided_slice %11 {offsets = [0, 384], sizes = [2, 128], strides = [1, 1]} : vector<2x1024xf32> to vector<2x128xf32>
    %34 = vector.broadcast %32 : vector<2x1xf32> to vector<2x128xf32>
    %35 = arith.mulf %34, %33 : vector<2x128xf32>
    %36 = arith.addf %31, %35 : vector<2x128xf32>
    %37 = vector.extract_strided_slice %17 {offsets = [0, 4], sizes = [2, 1], strides = [1, 1]} : vector<2x8xf32> to vector<2x1xf32>
    %38 = vector.extract_strided_slice %11 {offsets = [0, 512], sizes = [2, 128], strides = [1, 1]} : vector<2x1024xf32> to vector<2x128xf32>
    %39 = vector.broadcast %37 : vector<2x1xf32> to vector<2x128xf32>
    %40 = arith.mulf %39, %38 : vector<2x128xf32>
    %41 = arith.addf %36, %40 : vector<2x128xf32>
    %42 = vector.extract_strided_slice %17 {offsets = [0, 5], sizes = [2, 1], strides = [1, 1]} : vector<2x8xf32> to vector<2x1xf32>
    %43 = vector.extract_strided_slice %11 {offsets = [0, 640], sizes = [2, 128], strides = [1, 1]} : vector<2x1024xf32> to vector<2x128xf32>
    %44 = vector.broadcast %42 : vector<2x1xf32> to vector<2x128xf32>
    %45 = arith.mulf %44, %43 : vector<2x128xf32>
    %46 = arith.addf %41, %45 : vector<2x128xf32>
    %47 = vector.extract_strided_slice %17 {offsets = [0, 6], sizes = [2, 1], strides = [1, 1]} : vector<2x8xf32> to vector<2x1xf32>
    %48 = vector.extract_strided_slice %11 {offsets = [0, 768], sizes = [2, 128], strides = [1, 1]} : vector<2x1024xf32> to vector<2x128xf32>
    %49 = vector.broadcast %47 : vector<2x1xf32> to vector<2x128xf32>
    %50 = arith.mulf %49, %48 : vector<2x128xf32>
    %51 = arith.addf %46, %50 : vector<2x128xf32>
    %52 = vector.extract_strided_slice %17 {offsets = [0, 7], sizes = [2, 1], strides = [1, 1]} : vector<2x8xf32> to vector<2x1xf32>
    %53 = vector.extract_strided_slice %11 {offsets = [0, 896], sizes = [2, 128], strides = [1, 1]} : vector<2x1024xf32> to vector<2x128xf32>
    %54 = vector.broadcast %52 : vector<2x1xf32> to vector<2x128xf32>
    %55 = arith.mulf %54, %53 : vector<2x128xf32>
    %56 = arith.addf %51, %55 : vector<2x128xf32>
    %c0_11 = arith.constant 0 : index
    %c0_12 = arith.constant 0 : index
    %57 = vector.load %arg5[%c0_11, %c0_12] : memref<2x128xf32, #tpu.memory_space<vmem>>, vector<2x128xf32>
    tpu.vector_store %arg5[%c0_11, %c0_12], %56 {strides = array<i32>} : memref<2x128xf32, #tpu.memory_space<vmem>>, vector<2x128xf32>,
    return
  }
  func.func @transform_0(%arg0: i32) -> (i32, i32) {
    %c0_i32 = arith.constant 0 : i32
    %c0_i32_0 = arith.constant 0 : i32
    return %arg0, %c0_i32 : i32, i32
  }
  func.func @transform_1(%arg0: i32) -> (i32, i32) {
    %c0_i32 = arith.constant 0 : i32
    %c0_i32_0 = arith.constant 0 : i32
    %c0_i32_1 = arith.constant 0 : i32
    return %c0_i32, %c0_i32_0 : i32, i32
  }
  func.func @transform_2(%arg0: i32) -> (i32, i32) {
    %c0_i32 = arith.constant 0 : i32
    %c0_i32_0 = arith.constant 0 : i32
    %c0_i32_1 = arith.constant 0 : i32
    return %c0_i32, %c0_i32_0 : i32, i32
  }
  func.func @transform_3(%arg0: i32) -> (i32, i32) {
    %c0_i32 = arith.constant 0 : i32
    %c0_i32_0 = arith.constant 0 : i32
    %c0_i32_1 = arith.constant 0 : i32
    return %c0_i32, %c0_i32_0 : i32, i32
  }
  func.func @transform_4(%arg0: i32) -> (i32, i32) {
    %c0_i32 = arith.constant 0 : i32
    %c0_i32_0 = arith.constant 0 : i32
    return %arg0, %c0_i32 : i32, i32
  }
}

</mosaic_0001>

<bundles_post_ra>
// kernel: metric_model_forward.1
= control target key start
LH: loop header
LB: loop body
LE: loop exit
PB: predicated region body
PF: predicated region fallthrough
CT: control target
= control target key end

     0   :  { %v1067_v8 = vmov 0   ;;  %vm159_vm0 = vcmask 261120   ;;  %s1622_s0 = inlined_call_operand.vmem [shape: f32[2,32], index: 0, kind: input, shape index: {}]   ;;  %s1623_s1 = inlined_call_operand.vmem [shape: bf16[32,1024], index: 1, kind: input, shape index: {}]   ;;  %s1624_s2 = inlined_call_operand.vmem [shape: f32[1024,8], index: 2, kind: input, shape index: {}]   ;;  %s1625_s3 = inlined_call_operand.vmem [shape: f32[3,1024], index: 3, kind: input, shape index: {}]   ;;  %s1626_s4 = inlined_call_operand.hbm [shape: f32[2,128], index: 4, kind: output, shape index: {}]  }
   0x1   :  { %v29_v0 = vld [vmem:[%s1623_s1 + $0x40] sm:$0xff]  ;;  %v30_v2 = vld [vmem:[%s1623_s1 + $0x48] sm:$0xff]  ;;  %195 = vmatprep.mubr.bf16.mxu0 %v1067_v8  ;;  %236 = vmatprep.mubr.bf16.mxu1 %v1067_v8  ;;  %v31_v15 = vld [vmem:[%s1623_s1 + $0x50] sm:$0xff] }
   0x2   :  { %v33_v1 = vld [vmem:[%s1623_s1 + $0x60] sm:$0xff]  ;;  %v34_v4 = vld [vmem:[%s1623_s1 + $0x68] sm:$0xff]  ;;  %1034 = vset.pattern.permute.xlu0 %v1067_v8  ;;  %v35_v16 = vld [vmem:[%s1623_s1 + $0x70] sm:$0xff] }
   0x3   :  { %v872_v3 = vcombine.high %v29_v0, %v33_v1  ;;  %v871_v5 = vcombine.low %v29_v0, %v33_v1  ;;  %v21_v6 = vld [vmem:[%s1623_s1] sm:$0xff]  ;;  %v874_v9 = vcombine.high %v30_v2, %v34_v4  ;;  %v873_v10 = vcombine.low %v30_v2, %v34_v4  ;;  %v22_v12 = vld [vmem:[%s1623_s1 + $0x8] sm:$0xff]  ;;  %v32_v17 = vld [vmem:[%s1623_s1 + $0x58] sm:$0xff] }
   0x4   :  { %v25_v7 = vld [vmem:[%s1623_s1 + $0x20] sm:$0xff]  ;;  %v26_v13 = vld [vmem:[%s1623_s1 + $0x28] sm:$0xff]  ;;  %v36_v20 = vld [vmem:[%s1623_s1 + $0x78] sm:$0xff]  ;;  %v876_v22 = vcombine.high %v31_v15, %v35_v16  ;;  %v875_v29 = vcombine.low %v31_v15, %v35_v16 }
   0x5   :  { %v864_v11 = vcombine.high %v21_v6, %v25_v7  ;;  %175 = vmatprep.subr.bf16.mxu0 %v872_v3  ;;  %v866_v14 = vcombine.high %v22_v12, %v26_v13  ;;  %216 = vmatprep.subr.bf16.mxu1 %v874_v9  ;;  %v863_v18 = vcombine.low %v21_v6, %v25_v7  ;;  %v19_v19 = vld [vmem:[%s1622_s0] sm:$0x3]  ;;  %v23_v24 = vld [vmem:[%s1623_s1 + $0x10] sm:$0xff]  ;;  %v24_v27 = vld [vmem:[%s1623_s1 + $0x18] sm:$0xff] }
   0x6   :  { %176 = vmatpush1.bf16.msra.mxu0 %v871_v5  ;;  %217 = vmatpush1.bf16.msra.mxu1 %v873_v10  ;;  %v865_v21 = vcombine.low %v22_v12, %v26_v13  ;;  %v878_v23 = vcombine.high %v32_v17, %v36_v20  ;;  %v27_v25 = vld [vmem:[%s1623_s1 + $0x30] sm:$0xff]  ;;  %v20_v26 = vpack.c.bf16 %v19_v19, %v19_v19  ;;  %v28_v28 = vld [vmem:[%s1623_s1 + $0x38] sm:$0xff]  ;;  %v415_v43 = vld [vmem:[%s1624_s2 + $0xe8] sm:$0xff] }
   0x7   :  { %177 = vmatprep.subr.bf16.mxu0 %v864_v11  ;;  %218 = vmatprep.subr.bf16.mxu1 %v866_v14  ;;  %v877_v30 = vcombine.low %v32_v17, %v36_v20  ;;  %v868_v31 = vcombine.high %v23_v24, %v27_v25  ;;  %v870_v32 = vcombine.high %v24_v27, %v28_v28  ;;  %v417_v35 = vld [vmem:[%s1624_s2 + $0xf8] sm:$0xff]  ;;  %v416_v39 = vld [vmem:[%s1624_s2 + $0xf0] sm:$0xff]  ;;  %v447_v44 = vld [vmem:[%s1624_s2 + $0x1e8] sm:$0xff] }
   0x8   :  { %v867_v33 = vcombine.low %v23_v24, %v27_v25  ;;  %v869_v34 = vcombine.low %v24_v27, %v28_v28  ;;  %v449_v36 = vld [vmem:[%s1624_s2 + $0x1f8] sm:$0xff]  ;;  %v448_v40 = vld [vmem:[%s1624_s2 + $0x1f0] sm:$0xff]  ;;  %v399_v45 = vld [vmem:[%s1624_s2 + $0x68] sm:$0xff] }
   0x9   :  { %v401_v37 = vld [vmem:[%s1624_s2 + $0x78] sm:$0xff]  ;;  %v400_v41 = vld [vmem:[%s1624_s2 + $0x70] sm:$0xff] }
   0xa   :  { %178 = vmatpush1.bf16.msra.mxu0 %v863_v18  ;;  %219 = vmatpush1.bf16.msra.mxu1 %v865_v21  ;;  %v433_v38 = vld [vmem:[%s1624_s2 + $0x178] sm:$0xff]  ;;  %v432_v42 = vld [vmem:[%s1624_s2 + $0x170] sm:$0xff] }
   0xb   :  { %257 = vmatprep.subr.bf16.mxu0 %v876_v22  ;;  %298 = vmatprep.subr.bf16.mxu1 %v878_v23 }
   0xd   :  { %879 = vmatmul.mubr.msk.bf16.vlgmr.msra.gmra.mxu0 %vm159_vm0, %v20_v26  ;;  %880 = vmatmul.mubr.msk.bf16.vlgmr.msra.gmra.mxu1 %vm159_vm0, %v20_v26 }
   0xe   :  { %258 = vmatpush1.bf16.msra.mxu0 %v875_v29  ;;  %299 = vmatpush1.bf16.msra.mxu1 %v877_v30 }
   0xf   :  { %259 = vmatprep.subr.bf16.mxu0 %v868_v31  ;;  %300 = vmatprep.subr.bf16.mxu1 %v870_v32 }
  0x10   :  { %277 = vmatprep.mubr.bf16.mxu0 %v1067_v8  ;;  %318 = vmatprep.mubr.bf16.mxu1 %v1067_v8 }
  0x12   :  { %260 = vmatpush1.bf16.msra.mxu0 %v867_v33  ;;  %301 = vmatpush1.bf16.msra.mxu1 %v869_v34 }
  0x13   :  { %885 = vmatprep.subr.mxu0 %v417_v35  ;;  %920 = vmatprep.subr.mxu1 %v449_v36 }
  0x15   :  { %881 = vmatmul.mubr.msk.bf16.vlgmr.msra.gmra.mxu0 %vm159_vm0, %v20_v26  ;;  %882 = vmatmul.mubr.msk.bf16.vlgmr.msra.gmra.mxu1 %vm159_vm0, %v20_v26 }
  0x16   :  { %886 = vmatpush3.msra.mxu0 %v401_v37  ;;  %921 = vmatpush3.msra.mxu1 %v433_v38 }
  0x17   :  { %887 = vmatprep.subr.mxu0 %v416_v39 }
  0x18   :  { %9 = vsyncpa [#allocation3], 0  ;;  %922 = vmatprep.subr.mxu1 %v448_v40  ;;  %888 = vmatpush3.msra.mxu0 %v400_v41  ;;  %v431_v46 = vld [vmem:[%s1624_s2 + $0x168] sm:$0xff]  ;;  %v414_v47 = vld [vmem:[%s1624_s2 + $0xe0] sm:$0xff]  ;;  %v39_v37 = vlaneseq }
  0x19   :  { %923 = vmatpush3.msra.mxu1 %v432_v42  ;;  %889 = vmatprep.subr.mxu0 %v415_v43  ;;  %v446_v48 = vld [vmem:[%s1624_s2 + $0x1e0] sm:$0xff]  ;;  %v413_v51 = vld [vmem:[%s1624_s2 + $0xd8] sm:$0xff]  ;;  %v412_v55 = vld [vmem:[%s1624_s2 + $0xd0] sm:$0xff] }
  0x1a   :  { %v398_v49 = vld [vmem:[%s1624_s2 + $0x60] sm:$0xff]  ;;  %924 = vmatprep.subr.mxu1 %v447_v44  ;;  %890 = vmatpush3.msra.mxu0 %v399_v45  ;;  %v445_v52 = vld [vmem:[%s1624_s2 + $0x1d8] sm:$0xff]  ;;  %v444_v56 = vld [vmem:[%s1624_s2 + $0x1d0] sm:$0xff]  ;;  %v1354_v38 = vshrl.u32 %v39_v37, 7 }
  0x1b   :  { %v430_v50 = vld [vmem:[%s1624_s2 + $0x160] sm:$0xff]  ;;  %925 = vmatpush3.msra.mxu1 %v431_v46  ;;  %891 = vmatprep.subr.mxu0 %v414_v47  ;;  %v397_v53 = vld [vmem:[%s1624_s2 + $0x58] sm:$0xff]  ;;  %v396_v57 = vld [vmem:[%s1624_s2 + $0x50] sm:$0xff] }
  0x1c   :  { %926 = vmatprep.subr.mxu1 %v446_v48  ;;  %892 = vmatpush3.msra.mxu0 %v398_v49  ;;  %v429_v54 = vld [vmem:[%s1624_s2 + $0x158] sm:$0xff]  ;;  %v428_v58 = vld [vmem:[%s1624_s2 + $0x150] sm:$0xff]  ;;  %v411_v59 = vld [vmem:[%s1624_s2 + $0xc8] sm:$0xff]  ;;  %v41_v39 = vsub.s32 0, %v1354_v38  ;;  %v49_v41 = vsub.s32 2, %v1354_v38  ;;  %v45_v42 = vsub.s32 1, %v1354_v38 }
  0x1d   :  { %927 = vmatpush3.msra.mxu1 %v430_v50  ;;  %893 = vmatprep.subr.mxu0 %v413_v51  ;;  %v443_v60 = vld [vmem:[%s1624_s2 + $0x1c8] sm:$0xff]  ;;  %v410_v63 = vld [vmem:[%s1624_s2 + $0xc0] sm:$0xff]  ;;  %v409_v3 = vld [vmem:[%s1624_s2 + $0xb8] sm:$0xff]  ;;  %v53_v43 = vsub.s32 3, %v1354_v38 }
  0x1e   :  { %928 = vmatprep.subr.mxu1 %v445_v52  ;;  %894 = vmatpush3.msra.mxu0 %v397_v53  ;;  %v395_v61 = vld [vmem:[%s1624_s2 + $0x48] sm:$0xff]  ;;  %v442_v0 = vld [vmem:[%s1624_s2 + $0x1c0] sm:$0xff]  ;;  %v441_v4 = vld [vmem:[%s1624_s2 + $0x1b8] sm:$0xff] }
  0x1f   :  { %929 = vmatpush3.msra.mxu1 %v429_v54  ;;  %895 = vmatprep.subr.mxu0 %v412_v55  ;;  %v427_v62 = vld [vmem:[%s1624_s2 + $0x148] sm:$0xff]  ;;  %v394_v1 = vld [vmem:[%s1624_s2 + $0x40] sm:$0xff]  ;;  %v393_v5 = vld [vmem:[%s1624_s2 + $0x38] sm:$0xff] }
  0x20   :  { %930 = vmatprep.subr.mxu1 %v444_v56  ;;  %896 = vmatpush3.msra.mxu0 %v396_v57  ;;  %v426_v2 = vld [vmem:[%s1624_s2 + $0x140] sm:$0xff]  ;;  %v425_v6 = vld [vmem:[%s1624_s2 + $0x138] sm:$0xff]  ;;  %v408_v7 = vld [vmem:[%s1624_s2 + $0xb0] sm:$0xff] }
  0x21   :  { %931 = vmatpush3.msra.mxu1 %v428_v58  ;;  %897 = vmatprep.subr.mxu0 %v411_v59  ;;  %v440_v8 = vld [vmem:[%s1624_s2 + $0x1b0] sm:$0xff]  ;;  %v407_v11 = vld [vmem:[%s1624_s2 + $0xa8] sm:$0xff]  ;;  %v406_v15 = vld [vmem:[%s1624_s2 + $0xa0] sm:$0xff] }
  0x22   :  { %932 = vmatprep.subr.mxu1 %v443_v60  ;;  %898 = vmatpush3.msra.mxu0 %v395_v61  ;;  %v392_v9 = vld [vmem:[%s1624_s2 + $0x30] sm:$0xff]  ;;  %v439_v12 = vld [vmem:[%s1624_s2 + $0x1a8] sm:$0xff]  ;;  %v438_v16 = vld [vmem:[%s1624_s2 + $0x1a0] sm:$0xff] }
  0x23   :  { %933 = vmatpush3.msra.mxu1 %v427_v62  ;;  %899 = vmatprep.subr.mxu0 %v410_v63  ;;  %v424_v10 = vld [vmem:[%s1624_s2 + $0x130] sm:$0xff]  ;;  %v391_v13 = vld [vmem:[%s1624_s2 + $0x28] sm:$0xff]  ;;  %v390_v17 = vld [vmem:[%s1624_s2 + $0x20] sm:$0xff] }
  0x24   :  { %934 = vmatprep.subr.mxu1 %v442_v0  ;;  %900 = vmatpush3.msra.mxu0 %v394_v1  ;;  %v423_v14 = vld [vmem:[%s1624_s2 + $0x128] sm:$0xff]  ;;  %v422_v18 = vld [vmem:[%s1624_s2 + $0x120] sm:$0xff]  ;;  %v405_v19 = vld [vmem:[%s1624_s2 + $0x98] sm:$0xff] }
  0x25   :  { %935 = vmatpush3.msra.mxu1 %v426_v2  ;;  %901 = vmatprep.subr.mxu0 %v409_v3  ;;  %v437_v20 = vld [vmem:[%s1624_s2 + $0x198] sm:$0xff]  ;;  %v404_v23 = vld [vmem:[%s1624_s2 + $0x90] sm:$0xff]  ;;  %v403_v27 = vld [vmem:[%s1624_s2 + $0x88] sm:$0xff] }
  0x26   :  { %936 = vmatprep.subr.mxu1 %v441_v4  ;;  %902 = vmatpush3.msra.mxu0 %v393_v5  ;;  %v389_v21 = vld [vmem:[%s1624_s2 + $0x18] sm:$0xff]  ;;  %v436_v24 = vld [vmem:[%s1624_s2 + $0x190] sm:$0xff]  ;;  %v435_v28 = vld [vmem:[%s1624_s2 + $0x188] sm:$0xff] }
  0x27   :  { %937 = vmatpush3.msra.mxu1 %v425_v6  ;;  %903 = vmatprep.subr.mxu0 %v408_v7  ;;  %v421_v22 = vld [vmem:[%s1624_s2 + $0x118] sm:$0xff]  ;;  %v388_v25 = vld [vmem:[%s1624_s2 + $0x10] sm:$0xff]  ;;  %v387_v29 = vld [vmem:[%s1624_s2 + $0x8] sm:$0xff] }
  0x28   :  { %938 = vmatprep.subr.mxu1 %v440_v8  ;;  %904 = vmatpush3.msra.mxu0 %v392_v9  ;;  %v420_v26 = vld [vmem:[%s1624_s2 + $0x110] sm:$0xff]  ;;  %v419_v30 = vld [vmem:[%s1624_s2 + $0x108] sm:$0xff]  ;;  %v402_v31 = vld [vmem:[%s1624_s2 + $0x80] sm:$0xff] }
  0x29   :  { %939 = vmatpush3.msra.mxu1 %v424_v10  ;;  %905 = vmatprep.subr.mxu0 %v407_v11  ;;  %v434_v32 = vld [vmem:[%s1624_s2 + $0x180] sm:$0xff]  ;;  %v481_v35 = vld [vmem:[%s1624_s2 + $0x2f8] sm:$0xff]  ;;  %v460_v37 = vld [vmem:[%s1624_s2 + $0x250] sm:$0xff] }
  0x2a   :  { %940 = vmatprep.subr.mxu1 %v439_v12  ;;  %906 = vmatpush3.msra.mxu0 %v391_v13  ;;  %v386_v33 = vld [vmem:[%s1624_s2] sm:$0xff]  ;;  %v513_v36 = vld [vmem:[%s1624_s2 + $0x3f8] sm:$0xff]  ;;  %v480_v12 = vld [vmem:[%s1624_s2 + $0x2f0] sm:$0xff] }
  0x2b   :  { %941 = vmatpush3.msra.mxu1 %v423_v14  ;;  %907 = vmatprep.subr.mxu0 %v406_v15  ;;  %v418_v34 = vld [vmem:[%s1624_s2 + $0x100] sm:$0xff]  ;;  %v465_v9 = vld [vmem:[%s1624_s2 + $0x278] sm:$0xff]  ;;  %v512_v14 = vld [vmem:[%s1624_s2 + $0x3f0] sm:$0xff] }
  0x2c   :  { %942 = vmatprep.subr.mxu1 %v438_v16  ;;  %908 = vmatpush3.msra.mxu0 %v390_v17  ;;  %v1360_v40 = vld [vmem:[%s1625_s3] ss:$4 sm:$0xff]  ;;  %v1371_v48 = vld [vmem:[%s1625_s3 + $0x1] ss:$4 sm:$0xff] }
  0x2d   :  { %943 = vmatpush3.msra.mxu1 %v422_v18  ;;  %909 = vmatprep.subr.mxu0 %v405_v19  ;;  %v42_v44 = vrot.slane %v1360_v40, %v41_v39  ;;  %v50_v45 = vrot.slane %v1360_v40, %v49_v41  ;;  %v46_v46 = vrot.slane %v1360_v40, %v45_v42  ;;  %v497_v11 = vld [vmem:[%s1624_s2 + $0x378] sm:$0xff]  ;;  %v464_v15 = vld [vmem:[%s1624_s2 + $0x270] sm:$0xff]  ;;  %v479_v18 = vld [vmem:[%s1624_s2 + $0x2e8] sm:$0xff] }
  0x2e   :  { %944 = vmatprep.subr.mxu1 %v437_v20  ;;  %910 = vmatpush3.msra.mxu0 %v389_v21  ;;  %v54_v49 = vrot.slane %v1360_v40, %v53_v43  ;;  %v341_v54 = vrot.slane %v1371_v48, %v41_v39  ;;  %v349_v55 = vrot.slane %v1371_v48, %v49_v41  ;;  %v496_v17 = vld [vmem:[%s1624_s2 + $0x370] sm:$0xff]  ;;  %v511_v20 = vld [vmem:[%s1624_s2 + $0x3e8] sm:$0xff] }
  0x2f   :  { %945 = vmatpush3.msra.mxu1 %v421_v22  ;;  %911 = vmatprep.subr.mxu0 %v404_v23  ;;  %v345_v57 = vrot.slane %v1371_v48, %v45_v42  ;;  %v353_v62 = vrot.slane %v1371_v48, %v53_v43  ;;  %v463_v21 = vld [vmem:[%s1624_s2 + $0x268] sm:$0xff]  ;;  %v492_v39 = vld [vmem:[%s1624_s2 + $0x350] sm:$0xff] }
  0x30   :  { %946 = vmatprep.subr.mxu1 %v436_v24  ;;  %912 = vmatpush3.msra.mxu0 %v388_v25  ;;  %v495_v23 = vld [vmem:[%s1624_s2 + $0x368] sm:$0xff]  ;;  %v478_v24 = vld [vmem:[%s1624_s2 + $0x2e0] sm:$0xff] }
  0x31   :  { %947 = vmatpush3.msra.mxu1 %v420_v26  ;;  %913 = vmatprep.subr.mxu0 %v403_v27  ;;  %v510_v26 = vld [vmem:[%s1624_s2 + $0x3e0] sm:$0xff]  ;;  %v475_v41 = vld [vmem:[%s1624_s2 + $0x2c8] sm:$0xff] }
  0x32   :  { %948 = vmatprep.subr.mxu1 %v435_v28  ;;  %914 = vmatpush3.msra.mxu0 %v387_v29  ;;  %v462_v27 = vld [vmem:[%s1624_s2 + $0x260] sm:$0xff]  ;;  %v507_v42 = vld [vmem:[%s1624_s2 + $0x3c8] sm:$0xff] }
  0x33   :  { %949 = vmatpush3.msra.mxu1 %v419_v30  ;;  %915 = vmatprep.subr.mxu0 %v402_v31  ;;  %v494_v29 = vld [vmem:[%s1624_s2 + $0x360] sm:$0xff]  ;;  %v477_v30 = vld [vmem:[%s1624_s2 + $0x2d8] sm:$0xff]  ;;  %v459_v43 = vld [vmem:[%s1624_s2 + $0x248] sm:$0xff] }
  0x34   :  { %950 = vmatprep.subr.mxu1 %v434_v32  ;;  %916 = vmatpush3.msra.mxu0 %v386_v33  ;;  %v509_v32 = vld [vmem:[%s1624_s2 + $0x3d8] sm:$0xff] }
  0x35   :  { %951 = vmatpush3.msra.mxu1 %v418_v34  ;;  %955 = vmatprep.subr.mxu0 %v481_v35  ;;  %v461_v33 = vld [vmem:[%s1624_s2 + $0x258] sm:$0xff]  ;;  %v476_v35 = vld [vmem:[%s1624_s2 + $0x2d0] sm:$0xff] }
  0x36   :  { %990 = vmatprep.subr.mxu1 %v513_v36  ;;  %v493_v34 = vld [vmem:[%s1624_s2 + $0x358] sm:$0xff]  ;;  %v508_v36 = vld [vmem:[%s1624_s2 + $0x3d0] sm:$0xff] }
  0xcd   :  { %v197_v47 = vpop.f32.mrf.mxu0  ;;  %v238_v51 = vpop.f32.mrf.mxu1 }
  0xce   :  { %v198_v50 = vadd.f32 %v197_v47, %v42_v44  ;;  %v239_v52 = vadd.f32 %v238_v51, %v50_v45  ;;  %v61_v44 = vsub.s32 5, %v1354_v38  ;;  %v491_v45 = vld [vmem:[%s1624_s2 + $0x348] sm:$0xff]  ;;  %v506_v47 = vld [vmem:[%s1624_s2 + $0x3c0] sm:$0xff]  ;;  %v473_v51 = vld [vmem:[%s1624_s2 + $0x2b8] sm:$0xff] }
  0xcf   :  { %v199_v53 = vpop.f32.mrf.mxu0  ;;  %v240_v58 = vpop.f32.mrf.mxu1 }
  0xd0   :  { %v200_v56 = vadd.f32 %v199_v53, %v46_v46  ;;  %v327_v59 = vmax.f32 %v198_v50, 0.0  ;;  %v329_v60 = vmax.f32 %v239_v52, 0.0  ;;  %v241_v61 = vadd.f32 %v240_v58, %v54_v49  ;;  %v474_v46 = vld [vmem:[%s1624_s2 + $0x2c0] sm:$0xff]  ;;  %v505_v53 = vld [vmem:[%s1624_s2 + $0x3b8] sm:$0xff] }
  0xd1   :  { %v201_v63 = vpop.f32.mrf.mxu0  ;;  %v242_v1 = vpop.f32.mrf.mxu1  ;;  %v458_v49 = vld [vmem:[%s1624_s2 + $0x240] sm:$0xff]  ;;  %v69_v52 = vsub.s32 7, %v1354_v38  ;;  %v489_v58 = vld [vmem:[%s1624_s2 + $0x338] sm:$0xff] }
  0xd2   :  { %v328_v0 = vmax.f32 %v200_v56, 0.0  ;;  %v330_v2 = vmax.f32 %v241_v61, 0.0  ;;  %v1378_v4 = vadd.f32 %v349_v55, %v329_v60  ;;  %v1382_v7 = vadd.f32 %v341_v54, %v327_v59  ;;  %v490_v50 = vld [vmem:[%s1624_s2 + $0x340] sm:$0xff]  ;;  %v457_v54 = vld [vmem:[%s1624_s2 + $0x238] sm:$0xff]  ;;  %v472_v59 = vld [vmem:[%s1624_s2 + $0x2b0] sm:$0xff] }
  0xd3   :  { %v202_v3 = vpop.f32.mrf.mxu0  ;;  %v243_v6 = vpop.f32.mrf.mxu1  ;;  %v62_v55 = vrot.slane %v1360_v40, %v61_v44  ;;  %v65_v56 = vsub.s32 6, %v1354_v38  ;;  %v504_v60 = vld [vmem:[%s1624_s2 + $0x3b0] sm:$0xff]  ;;  %v471_v63 = vld [vmem:[%s1624_s2 + $0x2a8] sm:$0xff] }
  0xd4   :  { %v1380_v5 = vadd.f32 %v345_v57, %v328_v0  ;;  %v1384_v8 = vadd.f32 %v353_v62, %v330_v2  ;;  %v57_v57 = vsub.s32 4, %v1354_v38  ;;  %v456_v61 = vld [vmem:[%s1624_s2 + $0x230] sm:$0xff]  ;;  %v70_v62 = vrot.slane %v1360_v40, %v69_v52  ;;  %v503_v2 = vld [vmem:[%s1624_s2 + $0x3a8] sm:$0xff] }
  0xd5   :  { %v1389_v10 = vpop.f32.mrf.mxu0  ;;  %v1398_v13 = vpop.f32.mrf.mxu1  ;;  %v488_v38 = vld [vmem:[%s1624_s2 + $0x330] sm:$0xff]  ;;  %v66_v1 = vrot.slane %v1360_v40, %v65_v56  ;;  %v455_v3 = vld [vmem:[%s1624_s2 + $0x228] sm:$0xff] }
  0xd6   :  { %583 = vmatprep.mubr.f32.mxu0 %v1380_v5  ;;  %653 = vmatprep.mubr.f32.mxu1 %v1384_v8  ;;  %v58_v6 = vrot.slane %v1360_v40, %v57_v57  ;;  %v454_v40 = vld [vmem:[%s1624_s2 + $0x220] sm:$0xff] }
  0xd7   :  { %584 = vmatmul.mubr.f32.vlgmr.msra.gmra.mxu0 %v1382_v7  ;;  %v1408_v16 = vpop.f32.mrf.mxu0  ;;  %654 = vmatmul.mubr.f32.vlgmr.msra.gmra.mxu1 %v1378_v4  ;;  %v1417_v19 = vpop.f32.mrf.mxu1 }
  0xd8   :  { %956 = vmatpush3.msra.mxu0 %v465_v9  ;;  %991 = vmatpush3.msra.mxu1 %v497_v11  ;;  %v282_v0 = vadd.f32 %v1408_v16, %v62_v55  ;;  %v487_v9 = vld [vmem:[%s1624_s2 + $0x328] sm:$0xff]  ;;  %v470_v11 = vld [vmem:[%s1624_s2 + $0x2a0] sm:$0xff]  ;;  %v469_v16 = vld [vmem:[%s1624_s2 + $0x298] sm:$0xff] }
  0xd9   :  { %957 = vmatprep.subr.mxu0 %v480_v12  ;;  %v283_v22 = vpop.f32.mrf.mxu0  ;;  %992 = vmatprep.subr.mxu1 %v512_v14  ;;  %v324_v25 = vpop.f32.mrf.mxu1  ;;  %v502_v12 = vld [vmem:[%s1624_s2 + $0x3a0] sm:$0xff]  ;;  %v323_v14 = vadd.f32 %v1417_v19, %v70_v62  ;;  %v501_v19 = vld [vmem:[%s1624_s2 + $0x398] sm:$0xff] }
  0xda   :  { %958 = vmatpush3.msra.mxu0 %v464_v15  ;;  %993 = vmatpush3.msra.mxu1 %v496_v17  ;;  %v486_v15 = vld [vmem:[%s1624_s2 + $0x320] sm:$0xff]  ;;  %v332_v17 = vmax.f32 %v282_v0, 0.0  ;;  %v280_v22 = vadd.f32 %v1389_v10, %v58_v6  ;;  %v452_v10 = vld [vmem:[%s1624_s2 + $0x210] sm:$0xff]  ;;  %v1069_v0 = vmov 3   ;;  %v1073_v6 = vmov 6  }
  0xdb   :  { %959 = vmatprep.subr.mxu0 %v479_v18  ;;  %v284_v28 = vpop.f32.mrf.mxu0  ;;  %994 = vmatprep.subr.mxu1 %v511_v20  ;;  %v325_v31 = vpop.f32.mrf.mxu1  ;;  %v361_v18 = vrot.slane %v1371_v48, %v61_v44  ;;  %v321_v20 = vadd.f32 %v1398_v13, %v66_v1  ;;  %v468_v13 = vld [vmem:[%s1624_s2 + $0x290] sm:$0xff]  ;;  %v334_v25 = vmax.f32 %v323_v14, 0.0  ;;  %v1070_v1 = vmov 1  }
  0xdc   :  { %960 = vmatpush3.msra.mxu0 %v463_v21  ;;  %995 = vmatpush3.msra.mxu1 %v495_v23  ;;  %v453_v21 = vld [vmem:[%s1624_s2 + $0x218] sm:$0xff]  ;;  %v467_v28 = vld [vmem:[%s1624_s2 + $0x288] sm:$0xff]  ;;  %v365_v31 = vrot.slane %v1371_v48, %v65_v56 }
  0xdd   :  { %961 = vmatprep.subr.mxu0 %v478_v24  ;;  %996 = vmatprep.subr.mxu1 %v510_v26  ;;  %v485_v23 = vld [vmem:[%s1624_s2 + $0x318] sm:$0xff]  ;;  %v500_v24 = vld [vmem:[%s1624_s2 + $0x390] sm:$0xff]  ;;  %v369_v26 = vrot.slane %v1371_v48, %v69_v52 }
  0xde   :  { %962 = vmatpush3.msra.mxu0 %v462_v27  ;;  %997 = vmatpush3.msra.mxu1 %v494_v29  ;;  %v484_v27 = vld [vmem:[%s1624_s2 + $0x310] sm:$0xff]  ;;  %v1577_v29 = vadd.f32 %v361_v18, %v332_v17 }
  0xdf   :  { %963 = vmatprep.subr.mxu0 %v477_v30  ;;  %998 = vmatprep.subr.mxu1 %v509_v32  ;;  %v333_v30 = vmax.f32 %v321_v20, 0.0  ;;  %v499_v32 = vld [vmem:[%s1624_s2 + $0x388] sm:$0xff] }
  0xe0   :  { %964 = vmatpush3.msra.mxu0 %v461_v33  ;;  %999 = vmatpush3.msra.mxu1 %v493_v34  ;;  %v451_v33 = vld [vmem:[%s1624_s2 + $0x208] sm:$0xff]  ;;  %v331_v34 = vmax.f32 %v280_v22, 0.0 }
  0xe1   :  { %965 = vmatprep.subr.mxu0 %v476_v35  ;;  %1000 = vmatprep.subr.mxu1 %v508_v36  ;;  %v357_v35 = vrot.slane %v1371_v48, %v57_v57  ;;  %v483_v36 = vld [vmem:[%s1624_s2 + $0x308] sm:$0xff]  ;;  %v450_v48 = vld [vmem:[%s1624_s2 + $0x200] sm:$0xff] }
  0xe2   :  { %966 = vmatpush3.msra.mxu0 %v460_v37  ;;  %1001 = vmatpush3.msra.mxu1 %v492_v39  ;;  %v466_v37 = vld [vmem:[%s1624_s2 + $0x280] sm:$0xff] }
  0xe3   :  { %967 = vmatprep.subr.mxu0 %v475_v41  ;;  %1002 = vmatprep.subr.mxu1 %v507_v42  ;;  %v498_v39 = vld [vmem:[%s1624_s2 + $0x380] sm:$0xff]  ;;  %v1596_v41 = vadd.f32 %v369_v26, %v334_v25  ;;  %v382_v44 = vadd.f32 %v357_v35, %v331_v34 }
  0xe4   :  { %968 = vmatpush3.msra.mxu0 %v459_v43  ;;  %1003 = vmatpush3.msra.mxu1 %v491_v45  ;;  %v482_v42 = vld [vmem:[%s1624_s2 + $0x300] sm:$0xff]  ;;  %v1604_v43 = vadd.f32 %v365_v31, %v333_v30  ;;  %v1068_v45 = vmov 2  }
  0xe5   :  { %969 = vmatprep.subr.mxu0 %v474_v46  ;;  %1004 = vmatprep.subr.mxu1 %v506_v47 }
  0xe6   :  { %970 = vmatpush3.msra.mxu0 %v458_v49  ;;  %1005 = vmatpush3.msra.mxu1 %v490_v50 }
  0xe7   :  { %971 = vmatprep.subr.mxu0 %v473_v51  ;;  %1006 = vmatprep.subr.mxu1 %v505_v53  ;;  %v884_v51 = vld [vmem:[%s1625_s3 + $0x2] ss:$0 sm:$0xff]  ;;  %s1075_s3 = smov [#allocation2]  }
  0xe8   :  { %972 = vmatpush3.msra.mxu0 %v457_v54  ;;  %1007 = vmatpush3.msra.mxu1 %v489_v58  ;;  %s855_s30 = sshll.u32 %s1075_s3, 4  ;;  %s856_s30 = int_to_ptr.vmem [resolvable:$true] %s855_s30 }
  0xe9   :  { %973 = vmatprep.subr.mxu0 %v472_v59  ;;  %1008 = vmatprep.subr.mxu1 %v504_v60  ;;  %s1045_s5 = scalar_lea.vmem %s856_s30, 32  ;;  %p1050_p1 = scmp.lt.s32.totalorder %s856_s30, %s856_s30 }
  0xea   :  { %974 = vmatpush3.msra.mxu0 %v456_v61  ;;  %1009 = vmatpush3.msra.mxu1 %v488_v38  ;;  %p1046_p0 = scmp.ne.s32.totalorder %s856_s30, %s1045_s5  ;;  %p1051_p2 = scmp.lt.s32.totalorder %s1045_s5, %s1045_s5 }
  0xeb   :  { %975 = vmatprep.subr.mxu0 %v471_v63  ;;  %1010 = vmatprep.subr.mxu1 %v503_v2  ;;  %v1071_v2 = vmov 4  }
  0xec   :  { %976 = vmatpush3.msra.mxu0 %v455_v3  ;;  %1011 = vmatpush3.msra.mxu1 %v487_v9  ;;  %v1072_v3 = vmov 5   ;;  %v1074_v9 = vmov 7   ;;  %p1052_p3 = por %p1051_p2, %p1050_p1 }
  0xed   :  { %977 = vmatprep.subr.mxu0 %v470_v11  ;;  %1012 = vmatprep.subr.mxu1 %v502_v12 }
  0xee   :  { %978 = vmatpush3.msra.mxu0 %v454_v40  ;;  %1013 = vmatpush3.msra.mxu1 %v486_v15  ;;  %p1053_p4 = pnand %p1052_p3, %p1046_p0 }
  0xef   :  { %979 = vmatprep.subr.mxu0 %v469_v16  ;;  %1014 = vmatprep.subr.mxu1 %v501_v19 }
  0xf0   :  { %980 = vmatpush3.msra.mxu0 %v453_v21  ;;  %1015 = vmatpush3.msra.mxu1 %v485_v23 }
  0xf1   :  { %981 = vmatprep.subr.mxu0 %v468_v13  ;;  %1016 = vmatprep.subr.mxu1 %v500_v24 }
  0xf2   :  { %982 = vmatpush3.msra.mxu0 %v452_v10  ;;  %1017 = vmatpush3.msra.mxu1 %v484_v27 }
  0xf3   :  { %983 = vmatprep.subr.mxu0 %v467_v28  ;;  %1018 = vmatprep.subr.mxu1 %v499_v32 }
  0xf4   :  { %984 = vmatpush3.msra.mxu0 %v451_v33  ;;  %723 = vmatprep.mubr.f32.mxu0 %v1577_v29 }
  0xf5   :  { %1019 = vmatpush3.msra.mxu1 %v483_v36  ;;  %985 = vmatprep.subr.mxu0 %v466_v37 }
  0xf6   :  { %1020 = vmatprep.subr.mxu1 %v498_v39  ;;  %986 = vmatpush3.msra.mxu0 %v450_v48 }
  0xf7   :  { %1021 = vmatpush3.msra.mxu1 %v482_v42  ;;  %793 = vmatprep.mubr.f32.mxu1 %v1596_v41 }
  0xf8   :  { %724 = vmatmul.mubr.f32.vlgmr.msra.gmra.mxu0 %v382_v44  ;;  %794 = vmatmul.mubr.f32.vlgmr.msra.gmra.mxu1 %v1604_v43 }
  0xf9   :  { %1036 = vset.pattern.permute.xlu1 %v1068_v45 }
 0x197   :  { %v917_v46 = vpop.f32.mrf.mxu0  ;;  %v952_v49 = vpop.f32.mrf.mxu1 }
 0x199   :  { %v918_v47 = vpop.f32.mrf.mxu0  ;;  %v953_v52 = vpop.f32.mrf.mxu1 }
 0x19a   :  { %v919_v50 = vadd.f32 %v918_v47, %v917_v46  ;;  %v954_v55 = vadd.f32 %v953_v52, %v952_v49 }
 0x19c   :  { %v586_v53 = vadd.f32 %v919_v50, %v884_v51 }
 0x19e   :  { %v656_v58 = vadd.f32 %v954_v55, %v586_v53 }
 0x1b8   :  { %v987_v54 = vpop.f32.mrf.mxu0  ;;  %v1022_v56 = vpop.f32.mrf.mxu1 }
 0x1ba   :  { %v988_v57 = vpop.f32.mrf.mxu0  ;;  %v1023_v60 = vpop.f32.mrf.mxu1 }
 0x1bb   :  { %v989_v59 = vadd.f32 %v988_v57, %v987_v54  ;;  %v1024_v38 = vadd.f32 %v1023_v60, %v1022_v56 }
 0x1bd   :  { %v726_v61 = vadd.f32 %v989_v59, %v656_v58 }
 0x1bf   :  { %v796_v62 = vadd.f32 %v1024_v38, %v726_v61 }
 0x1c1   :  { %1043 = vtanh.f32 %v796_v62 }
 0x1ce   :  { %v1044_v63 = vpop.eup %1043 }
 0x1cf   :  { %813 = vperm.xlu1 %1036, %v1044_v63   ;;  %802 = vperm.xlu0 %1034, %v1044_v63  }
 0x1d3   :  { %1037 = vset.pattern.permute.xlu1 %v1069_v0  ;;  %1035 = vset.pattern.permute.xlu0 %v1070_v1 }
 0x1d4   :  { %819 = vperm.xlu1 %1037, %v1044_v63   ;;  %807 = vperm.xlu0 %1035, %v1044_v63  }
 0x1d8   :  { %1038 = vset.pattern.permute.xlu1 %v1071_v2  ;;  %1039 = vset.pattern.permute.xlu0 %v1072_v3 }
 0x1d9   :  { %825 = vperm.xlu1 %1038, %v1044_v63   ;;  %831 = vperm.xlu0 %1039, %v1044_v63  }
 0x1dd   :  { %1040 = vset.pattern.permute.xlu1 %v1073_v6  ;;  %1042 = vset.pattern.permute.xlu0 %v1074_v9 }
 0x1de   :  { %837 = vperm.xlu1 %1040, %v1044_v63  }
 0x1e2   :  { %1041 = vset.pattern.permute.xlu1 %v1074_v9 }
 0x1e3   :  { %843 = vperm.xlu1 %1041, %v1044_v63  }
 0x24a   :  { %v814_v11 = vpop.permute.xlu1 %813  ;;  %v803_v12 = vpop.permute.xlu0 %802 }
 0x24b   :  { %v805_v15 = vmul.f32 %v803_v12, %v1382_v7  ;;  %v816_v17 = vmul.f32 %v814_v11, %v1378_v4 }
 0x24f   :  { %v820_v40 = vpop.permute.xlu1 %819  ;;  %v808_v14 = vpop.permute.xlu0 %807 }
 0x250   :  { %v810_v16 = vmul.f32 %v808_v14, %v1380_v5  ;;  %v822_v20 = vmul.f32 %v820_v40, %v1384_v8 }
 0x252   :  { %v811_v18 = vadd.f32 %v810_v16, %v805_v15 }
 0x254   :  { %v817_v19 = vadd.f32 %v816_v17, %v811_v18  ;;  %v826_v21 = vpop.permute.xlu1 %825  ;;  %v832_v13 = vpop.permute.xlu0 %831 }
 0x255   :  { %v828_v22 = vmul.f32 %v826_v21, %v382_v44  ;;  %v834_v10 = vmul.f32 %v832_v13, %v1577_v29 }
 0x256   :  { %v823_v23 = vadd.f32 %v822_v20, %v817_v19 }
 0x258   :  { %v829_v24 = vadd.f32 %v828_v22, %v823_v23 }
 0x259   :  { %v838_v25 = vpop.permute.xlu1 %837 }
 0x25a   :  { %v835_v26 = vadd.f32 %v834_v10, %v829_v24  ;;  %v840_v27 = vmul.f32 %v838_v25, %v1604_v43 }
 0x25c   :  { %v841_v5 = vadd.f32 %v840_v27, %v835_v26 }
 0x25e   :  { %v844_v7 = vpop.permute.xlu1 %843 }
 0x25f   :  { %v846_v4 = vmul.f32 %v844_v7, %v1596_v41 }
 0x261   :  { %v847_v28 = vadd.f32 %v846_v4, %v841_v5 }
 0x263   :  { %848 = vst [vmem:[#allocation2] sm:$0x3] %v847_v28 }
 0x264   :  { %1056 = shalt.err (!%p1053_p4)
}
 0x265   :  { %858 = dma.vmem_to_hbm [thread:$0]  %s856_s30, 32, %s1626_s4, [#allocation3]  }
 0x266   :  { %1065 = dma.done.wait [#allocation3], 32  }
 0x267   :  { %1066 = vsyncadd [#allocation3], 4294967264 }
 0x268   :  { %862 = vsyncpa [#allocation3], 1 }

</bundles_post_ra>
